<compile_context>
chip_gen: v7x
topology: tpu7x:2x2x1
jax: 0.10.0
libtpu: 0.0.40
codegen_flags: <defaults>
</compile_context>

<pallas_src>
import jax
import jax.numpy as jnp
from jax.experimental import pallas as pl
from jax.experimental.pallas import tpu as pltpu

_LANE = 128
_SUBLANE = 8
# ~3 MiB per block: 2 input bufs + 2 output bufs ~= 12 MiB, safely under v5e's
# 16 MiB default scoped VMEM; measured streaming plateau (~85% HBM BW) is
# already reached well below this block size.
_BLOCK_BUDGET_BYTES = 3 << 20


def _scale_bias_sigmoid_kernel(x_ref, s_ref, b_ref, o_ref):
    # x: (tr, tc); s, b: (tr, 1) broadcast along lanes.
    # One VPU fma + one EUP sigmoid per element; DMA-throughput bound.
    o_ref[...] = jax.nn.sigmoid(x_ref[...] * s_ref[...] + b_ref[...])


def _fold_factor(rows, cols):
    """Smallest k (<=64) dividing cols with rows*k % 8 == 0 and cols//k % 128 == 0.

    Folding a spatial factor into the row axis fills all 8 sublanes when
    N*C < 8, so every vreg / DMA / VPU op is fully occupied.
    """
    if rows % _SUBLANE == 0:
        return 1
    for k in range(2, min(cols, 64) + 1):
        if cols % k == 0 and (rows * k) % _SUBLANE == 0 and (cols // k) % _LANE == 0:
            return k
    return 1


def _pick_tiles(rows, cols, itemsize):
    """Row/column tile sizes.

    `rows` is always a multiple of 8 here (folded or zero-padded).  Columns are
    tiled in lane-dense multiples of 128 (ragged last block handled by the
    cdiv grid), sized to keep one block under the VMEM budget.
    """
    tile_rows = min(rows, 512)  # multiple of 8 (rows is), keeps blocks rectangular
    if cols < _LANE:
        tile_cols = cols        # narrow last dim: must use the full extent
    else:
        max_lane_tiles = max(1, _BLOCK_BUDGET_BYTES // (tile_rows * itemsize * _LANE))
        tile_cols = min(max_lane_tiles * _LANE, pl.cdiv(cols, _LANE) * _LANE)
    return tile_rows, tile_cols


def conv1x1_grouped_sigmoid(x, weight, bias):
    """Grouped 1x1 conv (groups == C_in == C_out) followed by sigmoid.

    x: (N, C, H, W); weight: (C,); bias: (C,).
    """
    N, C, H, W = x.shape
    dtype = x.dtype
    rows, cols = N * C, H * W

    # ---- layout: lane-dense 2-D slab with filled sublanes -------------------
    k = _fold_factor(rows, cols)
    f_rows, f_cols = rows * k, cols // k
    x2d = x.reshape(f_rows, f_cols)  # contiguous -> free reshape

    # Folded row r corresponds to channel (r // k) % C.
    scale = jnp.repeat(jnp.tile(weight.astype(dtype), (N,)), k).reshape(f_rows, 1)
    shift = jnp.repeat(jnp.tile(bias.astype(dtype), (N,)), k).reshape(f_rows, 1)

    # Pad rows to a multiple of 8 so row tiles are always sublane-aligned.
    pad_rows = (-f_rows) % _SUBLANE
    if pad_rows:
        x2d = jnp.pad(x2d, ((0, pad_rows), (0, 0)))
        scale = jnp.pad(scale, ((0, pad_rows), (0, 0)))
        shift = jnp.pad(shift, ((0, pad_rows), (0, 0)))
    p_rows = f_rows + pad_rows

    itemsize = jnp.dtype(dtype).itemsize
    tile_rows, tile_cols = _pick_tiles(p_rows, f_cols, itemsize)
    grid = (pl.cdiv(p_rows, tile_rows), pl.cdiv(f_cols, tile_cols))

    out2d = pl.pallas_call(
        _scale_bias_sigmoid_kernel,
        out_shape=jax.ShapeDtypeStruct((p_rows, f_cols), dtype),
        grid_spec=pltpu.PrefetchScalarGridSpec(
            num_scalar_prefetch=0,
            grid=grid,
            in_specs=[
                pl.BlockSpec((tile_rows, tile_cols), lambda i, j: (i, j)),
                pl.BlockSpec((tile_rows, 1), lambda i, j: (i, 0)),
                pl.BlockSpec((tile_rows, 1), lambda i, j: (i, 0)),
            ],
            out_specs=pl.BlockSpec((tile_rows, tile_cols), lambda i, j: (i, j)),
        ),
        compiler_params=pltpu.CompilerParams(
            dimension_semantics=("parallel", "parallel")),
    )(x2d, scale, shift)

    if pad_rows:
        out2d = out2d[:f_rows]
    return out2d.reshape(N, C, H, W)


def reference(x, weight, bias):
    # Pure-JAX reference of the degenerate grouped 1x1 conv + sigmoid.
    return jax.nn.sigmoid(x * weight[None, :, None, None]
                          + bias[None, :, None, None])


if __name__ == "__main__":
    key = jax.random.PRNGKey(0)
    kx, kw, kb = jax.random.split(key, 3)

    # Module implies C_in = C_out = 2 (the original test input with 5 channels
    # would not even run through the PyTorch conv).
    N, C, H, W = 2, 2, 16, 16
    x = jax.random.normal(kx, (N, C, H, W), dtype=jnp.float32)

    # Conv2d(2, 2, 1, groups=2) weight has shape (2, 1, 1, 1) -> flatten to (2,).
    weight = jax.random.normal(kw, (C,), dtype=jnp.float32)
    bias = jax.random.normal(kb, (C,), dtype=jnp.float32)

    fn = jax.jit(conv1x1_grouped_sigmoid)
    out = jax.block_until_ready(fn(x, weight, bias))

    ref = reference(x, weight, bias)
    assert out.shape == (N, C, H, W)
    assert jnp.allclose(out, ref, atol=1e-6, rtol=1e-6)

    print("KERNEL_OK")
</pallas_src>

<mosaic_0001>
module attributes {stable_mosaic.version = 11 : i64} {
  func.func @_scale_bias_sigmoid_kernel(%arg0: i32, %arg1: i32, %arg2: memref<8x128xf32, #tpu.memory_space<vmem>>, %arg3: memref<8x1xf32, #tpu.memory_space<vmem>>, %arg4: memref<8x1xf32, #tpu.memory_space<vmem>>, %arg5: memref<8x128xf32, #tpu.memory_space<vmem>>) attributes {dimension_semantics = [#tpu.dimension_semantics<parallel>, #tpu.dimension_semantics<parallel>], iteration_bounds = array<i64: 1, 1>, scalar_prefetch = 0 : i64, scratch_operands = 0 : i64, tpu.core_type = #tpu.core_type<tc>, window_params = [{transform_indices = @transform_0, window_bounds = array<i64: 8, 128>}, {transform_indices = @transform_1, window_bounds = array<i64: 8, 1>}, {transform_indices = @transform_2, window_bounds = array<i64: 8, 1>}, {transform_indices = @transform_3, window_bounds = array<i64: 8, 128>}]} {
    %c0 = arith.constant 0 : index
    %c0_0 = arith.constant 0 : index
    %0 = vector.load %arg2[%c0, %c0_0] : memref<8x128xf32, #tpu.memory_space<vmem>>, vector<8x128xf32>
    %c0_1 = arith.constant 0 : index
    %c0_2 = arith.constant 0 : index
    %1 = vector.load %arg3[%c0_1, %c0_2] : memref<8x1xf32, #tpu.memory_space<vmem>>, vector<8x1xf32>
    %2 = vector.broadcast %1 : vector<8x1xf32> to vector<8x128xf32>
    %3 = arith.mulf %0, %2 : vector<8x128xf32>
    %c0_3 = arith.constant 0 : index
    %c0_4 = arith.constant 0 : index
    %4 = vector.load %arg4[%c0_3, %c0_4] : memref<8x1xf32, #tpu.memory_space<vmem>>, vector<8x1xf32>
    %5 = vector.broadcast %4 : vector<8x1xf32> to vector<8x128xf32>
    %6 = arith.addf %3, %5 : vector<8x128xf32>
    %7 = arith.negf %6 : vector<8x128xf32>
    %8 = math.exp %7 : vector<8x128xf32>
    %cst = arith.constant 1.000000e+00 : f32
    %9 = vector.broadcast %cst : f32 to vector<8x128xf32>
    %10 = arith.addf %9, %8 : vector<8x128xf32>
    %11 = arith.divf %9, %10 : vector<8x128xf32>
    %c0_5 = arith.constant 0 : index
    %c0_6 = arith.constant 0 : index
    %12 = vector.load %arg5[%c0_5, %c0_6] : memref<8x128xf32, #tpu.memory_space<vmem>>, vector<8x128xf32>
    tpu.vector_store %arg5[%c0_5, %c0_6], %11 {strides = array<i32>} : memref<8x128xf32, #tpu.memory_space<vmem>>, vector<8x128xf32>,
    return
  }
  func.func @transform_0(%arg0: i32, %arg1: i32) -> (i32, i32) {
    %c0_i32 = arith.constant 0 : i32
    return %arg0, %arg1 : i32, i32
  }
  func.func @transform_1(%arg0: i32, %arg1: i32) -> (i32, i32) {
    %c0_i32 = arith.constant 0 : i32
    %c0_i32_0 = arith.constant 0 : i32
    return %arg0, %c0_i32 : i32, i32
  }
  func.func @transform_2(%arg0: i32, %arg1: i32) -> (i32, i32) {
    %c0_i32 = arith.constant 0 : i32
    %c0_i32_0 = arith.constant 0 : i32
    return %arg0, %c0_i32 : i32, i32
  }
  func.func @transform_3(%arg0: i32, %arg1: i32) -> (i32, i32) {
    %c0_i32 = arith.constant 0 : i32
    return %arg0, %arg1 : i32, i32
  }
}

</mosaic_0001>

<bundles_post_ra>
// kernel: tile.14
= control target key start
LH: loop header
LB: loop body
LE: loop exit
PB: predicated region body
PF: predicated region fallthrough
CT: control target
= control target key end

     0   :  { %vm7_vm0 = vcmask 15360   ;;  %vm13_vm1 = vcmask 31760   ;;  %s39_s0 = inlined_call_operand.vmem [shape: f32[2,2], index: 0, kind: input, shape index: {}]   ;;  %s40_s1 = inlined_call_operand.vmem [shape: f32[4], index: 1, kind: output, shape index: {}]  }
   0x1   :  { %v4_v0 = vld [vmem:[%s39_s0] sm:$0x3]  ;;  %s22_s0 = smov 2  }
   0x2   :  { %5 = vst [vmem:[#allocation1] sm:$0x3] %v4_v0 }
   0x9   :  { %v10_v1 = vld [vmem:[#allocation1 + $0x1] sm:$0x1]   ;;  %v6_v2 = vld [vmem:[#allocation1] sm:$0x1]  }
   0xa   :  { %11 = vrot.lane.b32.xlu0 %v10_v1, %s22_s0  ;;  %8 = vst.msk [vmem:[#allocation0] sm:$0x1] %vm7_vm0, %v6_v2  }
  0x7c   :  { %v12_v3 = vpop.permute.xlu0 %11  }
  0x7d   :  { %14 = vst.msk [vmem:[#allocation0] sm:$0x1] %vm13_vm1, %v12_v3  }
  0x84   :  { %v18_v4 = vld [vmem:[#allocation0] sm:$0x1] }
  0x85   :  { %20 = vst [vmem:[%s40_s1] sm:$0x1] %v18_v4 }

// kernel: tile.13
= control target key start
LH: loop header
LB: loop body
LE: loop exit
PB: predicated region body
PF: predicated region fallthrough
CT: control target
= control target key end

     0   :  { %s22_s0 = inlined_call_operand.vmem [shape: f32[2], index: 0, kind: input, shape index: {}]   ;;  %s23_s1 = inlined_call_operand.vmem [shape: f32[2,2], index: 1, kind: output, shape index: {}]  }
   0x1   :  { %v4_v0 = vld [vmem:[%s22_s0] ss:$0 sm:$0xff] }
   0x2   :  { %5 = vst [vmem:[%s23_s1] sm:$0x3] %v4_v0 }

// kernel: conv1x1_grouped_sigmoid.1
= control target key start
LH: loop header
LB: loop body
LE: loop exit
PB: predicated region body
PF: predicated region fallthrough
CT: control target
= control target key end

     0   :  { %v47_v0 = vmov 0   ;;  %s80_s1 = inlined_call_operand.vmem [shape: f32[8,1], index: 1, kind: input, shape index: {}]   ;;  %s81_s2 = inlined_call_operand.vmem [shape: f32[8,1], index: 2, kind: input, shape index: {}]   ;;  %s82_s0 = inlined_call_operand.vmem [shape: f32[8,128], index: 0, kind: input, shape index: {}]   ;;  %s83_s3 = inlined_call_operand.vmem [shape: f32[8,128], index: 3, kind: output, shape index: {}]  }
   0x1   :  { %42 = vset.pattern.permute.xlu0 %v47_v0  ;;  %v15_v1 = vld [vmem:[%s80_s1] sm:$0xff] }
   0x2   :  { %18 = vperm.xlu0 %42, %v15_v1   ;;  %v22_v2 = vld [vmem:[%s81_s2] sm:$0xff] }
   0x3   :  { %v14_v4 = vld [vmem:[%s82_s0] sm:$0xff] }
   0x6   :  { %25 = vperm.xlu0 %42, %v22_v2  }
  0x81   :  { %v19_v3 = vpop.permute.xlu0 %18 }
  0x82   :  { %v21_v5 = vmul.f32 %v19_v3, %v14_v4 }
  0x85   :  { %v26_v6 = vpop.permute.xlu0 %25 }
  0x86   :  { %v28_v7 = vadd.f32 %v26_v6, %v21_v5 }
  0x88   :  { %v40_v8 = vmul.f32 -1.442695, %v28_v7 }
  0x8a   :  { %43 = vpow2.f32 %v40_v8 }
  0x94   :  { %v44_v9 = vpop.eup %43 }
  0x95   :  { %v32_v10 = vadd.f32 1.0, %v44_v9 }
  0x97   :  { %45 = vrcp.f32 %v32_v10 }
  0xa1   :  { %v46_v11 = vpop.eup %45 }
  0xa2   :  { %35 = vst [vmem:[%s83_s3] sm:$0xff] %v46_v11 }

</bundles_post_ra>
